<compile_context>
chip_gen: v5e
topology: v5e:2x2
jax: 0.10.0
libtpu: 0.0.40
codegen_flags: <defaults>
</compile_context>

<pallas_src>
import functools

import jax
import jax.numpy as jnp
from jax.experimental import pallas as pl
from jax.experimental.pallas import tpu as pltpu


def _round_up(x, m):
    return (x + m - 1) // m * m


# ---------------------------------------------------------------------------
# pltpu.roll convention probe (documented to follow jnp.roll; probed once on
# device so the tap alignment below is correct under either sign convention).
# ---------------------------------------------------------------------------
def _roll_probe_kernel(x_ref, o_ref):
    o_ref[...] = pltpu.roll(x_ref[...], shift=1, axis=1)


@functools.lru_cache(maxsize=1)
def _roll_matches_numpy() -> bool:
    x = jax.lax.broadcasted_iota(jnp.int32, (8, 128), 1)
    y = pl.pallas_call(
        _roll_probe_kernel,
        out_shape=jax.ShapeDtypeStruct((8, 128), jnp.int32),
    )(x)
    return int(y[0, 0]) == 127          # numpy convention: out[0] == x[-1]


def _shift_flat(x, off, hw, roll_is_numpy):
    """Return s with s[:, p] = x[:, (p + off) % hw] (lane-axis shift)."""
    if off == 0:
        return x
    shift = (hw - off) if roll_is_numpy else off
    return pltpu.roll(x, shift=shift, axis=1)


# ---------------------------------------------------------------------------
# Kernel 1 (fused): conv1(3x3 valid)+bias+exact GELU -> conv2(3x3 valid)+bias,
# plus per-image per-channel [sum, sumsq] of the pre-bias conv2 output over
# the valid (H-4, W-4) window.  Layout: channels on sublanes, flattened H*W
# spatial on lanes (full width; wrap positions masked in-kernel).
# ---------------------------------------------------------------------------
def _fused_conv_block_kernel(x_ref, w1_ref, b1_ref, w2_ref, b2_ref,
                             h2_ref, stats_ref, *, H, W, roll_is_numpy):
    HW = H * W
    Cp = w1_ref.shape[1]                               # (padded) out channels

    # flat-position validity masks, built in-kernel (no HBM mask / no DMA)
    pos = jax.lax.broadcasted_iota(jnp.int32, (1, HW), 1)
    col = pos % W
    row = pos // W
    valid1 = jnp.logical_and(col < W - 2, row < H - 2)   # conv1-valid positions
    valid2 = jnp.logical_and(col < W - 4, row < H - 4)   # conv2-valid positions

    # ---- conv1: 9 consecutive acc += (Cp,Cin)@(Cin,HW) MXU matmuls ---------
    x = x_ref[0, :, :].astype(jnp.float32)               # (Cin_p, HW)
    acc1 = jnp.zeros((Cp, HW), jnp.float32)
    for kh in range(3):
        for kw in range(3):
            off = kh * W + kw
            slab = _shift_flat(x, off, HW, roll_is_numpy)
            acc1 = acc1 + jnp.dot(w1_ref[kh * 3 + kw, :, :],
                                  slab.astype(jnp.bfloat16),
                                  preferred_element_type=jnp.float32)
    acc1 = acc1 + b1_ref[...]                             # (Cp,1) lane-broadcast

    # exact erf GELU (PyTorch F.gelu default); zero the wrap positions so the
    # intermediate is fully defined (valid conv2 outputs never read them).
    h1 = jnp.where(valid1, jax.nn.gelu(acc1, approximate=False), 0.0)

    # ---- conv2 (pre-bias accumulation) --------------------------------------
    acc2 = jnp.zeros((Cp, HW), jnp.float32)
    for kh in range(3):
        for kw in range(3):
            off = kh * W + kw
            slab = _shift_flat(h1, off, HW, roll_is_numpy)
            acc2 = acc2 + jnp.dot(w2_ref[kh * 3 + kw, :, :],
                                  slab.astype(jnp.bfloat16),
                                  preferred_element_type=jnp.float32)

    # fused BatchNorm2d statistics on the PRE-bias values (bias is re-added
    # to the mean in the wrapper; variance is shift-invariant).
    a = jnp.where(valid2, acc2, 0.0)
    stats_ref[0, :, 0:1] = jnp.sum(a, axis=1, keepdims=True)
    stats_ref[0, :, 1:2] = jnp.sum(a * a, axis=1, keepdims=True)

    # pre-BN conv2 output (bf16 halves HBM bytes); lane-dense full-width store
    h2_ref[0, :, :] = (acc2 + b2_ref[...]).astype(h2_ref.dtype)


# ---------------------------------------------------------------------------
# Kernel 2: y = GELU(h2 * scale + shift); scale/shift fold BN mean/var/gamma/
# beta.  Math in f32 (v5e has no bf16 VPU/EUP); lane-dense full-width store.
# ---------------------------------------------------------------------------
def _bn_gelu_kernel(h2_ref, scale_ref, shift_ref, o_ref):
    y = h2_ref[0, :, :].astype(jnp.float32) * scale_ref[...] + shift_ref[...]
    o_ref[0, :, :] = jax.nn.gelu(y, approximate=False).astype(o_ref.dtype)


# ---------------------------------------------------------------------------
# Module forward: ConvBlock2D3x3
# ---------------------------------------------------------------------------
@functools.lru_cache(maxsize=2)
def _build_forward(roll_is_numpy: bool):

    @jax.jit
    def forward(x_nchw, w1, b1, w2, b2, gamma, beta, eps):
        N, Cin, H, W = x_nchw.shape
        Cout = w1.shape[0]
        HW = H * W
        Ho, Wo = H - 4, W - 4

        # pad channel counts to a multiple of 8 (sublane tile); zero weights
        # make the padded channels exact no-ops.  No-op at the test shape for
        # Cout (=8); Cin 4 -> 8.
        Cin_p = _round_up(Cin, 8)
        Cp = _round_up(Cout, 8)
        if Cin_p != Cin:
            x_nchw = jnp.pad(x_nchw, ((0, 0), (0, Cin_p - Cin), (0, 0), (0, 0)))
            w1 = jnp.pad(w1, ((0, 0), (0, Cin_p - Cin), (0, 0), (0, 0)))
        if Cp != Cout:
            w1 = jnp.pad(w1, ((0, Cp - Cout), (0, 0), (0, 0), (0, 0)))
            w2 = jnp.pad(w2, ((0, Cp - Cout), (0, Cp - Cout), (0, 0), (0, 0)))
            b1 = jnp.pad(b1, (0, Cp - Cout))
            b2 = jnp.pad(b2, (0, Cp - Cout))
            gamma = jnp.pad(gamma, (0, Cp - Cout), constant_values=1.0)
            beta = jnp.pad(beta, (0, Cp - Cout))

        # NCHW consumed directly: (N,C,H,W) -> (N,C,H*W) is a free reshape
        # (no transpose pass); flattened spatial sits on the lane dim.
        x_flat = x_nchw.reshape(N, Cin_p, HW)

        # (O,I,kh,kw) -> (9,O,I); bf16 MXU operands (weights are tiny).
        w1_9 = jnp.transpose(w1, (2, 3, 0, 1)).reshape(9, Cp, Cin_p)
        w1_9 = w1_9.astype(jnp.bfloat16)
        w2_9 = jnp.transpose(w2, (2, 3, 0, 1)).reshape(9, Cp, Cp)
        w2_9 = w2_9.astype(jnp.bfloat16)
        b1c = b1.reshape(Cp, 1).astype(jnp.float32)
        b2c = b2.reshape(Cp, 1).astype(jnp.float32)

        kernel = functools.partial(_fused_conv_block_kernel, H=H, W=W,
                                   roll_is_numpy=roll_is_numpy)
        h2, stats = pl.pallas_call(
            kernel,
            out_shape=(jax.ShapeDtypeStruct((N, Cp, HW), jnp.bfloat16),
                       jax.ShapeDtypeStruct((N, Cp, 2), jnp.float32)),
            grid=(N,),
            in_specs=[
                pl.BlockSpec((1, Cin_p, HW), lambda n: (n, 0, 0)),
                pl.BlockSpec((9, Cp, Cin_p), lambda n: (0, 0, 0)),
                pl.BlockSpec((Cp, 1), lambda n: (0, 0)),
                pl.BlockSpec((9, Cp, Cp), lambda n: (0, 0, 0)),
                pl.BlockSpec((Cp, 1), lambda n: (0, 0)),
            ],
            out_specs=(pl.BlockSpec((1, Cp, HW), lambda n: (n, 0, 0)),
                       pl.BlockSpec((1, Cp, 2), lambda n: (n, 0, 0))),
            compiler_params=pltpu.CompilerParams(
                dimension_semantics=("parallel",),     # v7x: 2 TCs share N
                vmem_limit_bytes=32 * 1024 * 1024),
        )(x_flat, w1_9, b1c, w2_9, b2c)

        # training-mode BatchNorm2d batch statistics (biased variance) from
        # the fused per-image pre-bias partial sums.
        count = N * Ho * Wo
        s = jnp.sum(stats[:, :, 0], axis=0)
        ss = jnp.sum(stats[:, :, 1], axis=0)
        mean_pre = s / count
        var = jnp.maximum(ss / count - mean_pre * mean_pre, 0.0)
        mean = mean_pre + b2.astype(jnp.float32)
        inv = jax.lax.rsqrt(var + eps)
        g32 = gamma.astype(jnp.float32)
        scale = (g32 * inv).reshape(Cp, 1)
        shift = (beta.astype(jnp.float32) - mean * g32 * inv).reshape(Cp, 1)

        out_flat = pl.pallas_call(
            _bn_gelu_kernel,
            out_shape=jax.ShapeDtypeStruct((N, Cp, HW), jnp.float32),
            grid=(N,),
            in_specs=[
                pl.BlockSpec((1, Cp, HW), lambda n: (n, 0, 0)),
                pl.BlockSpec((Cp, 1), lambda n: (0, 0)),
                pl.BlockSpec((Cp, 1), lambda n: (0, 0)),
            ],
            out_specs=pl.BlockSpec((1, Cp, HW), lambda n: (n, 0, 0)),
            compiler_params=pltpu.CompilerParams(
                dimension_semantics=("parallel",),
                vmem_limit_bytes=32 * 1024 * 1024),
        )(h2, scale, shift)

        # free reshape back to NCHW + ONE static slice to the valid window
        return out_flat.reshape(N, Cp, H, W)[:, :Cout, :Ho, :Wo]

    return forward


def conv_block_2d_3x3(x_nchw, w1, b1, w2, b2, gamma, beta, eps=1e-5):
    """Forward of ConvBlock2D3x3 (BatchNorm2d uses batch statistics)."""
    return _build_forward(_roll_matches_numpy())(
        x_nchw, w1, b1, w2, b2, gamma, beta, jnp.float32(eps))


# ---------------------------------------------------------------------------
# Pure-JAX reference (mirrors the PyTorch module in training mode)
# ---------------------------------------------------------------------------
def _reference_forward(x, w1, b1, w2, b2, gamma, beta, eps=1e-5):
    dn = ("NCHW", "OIHW", "NCHW")
    h1 = jax.lax.conv_general_dilated(x, w1, (1, 1), "VALID",
                                      dimension_numbers=dn)
    h1 = jax.nn.gelu(h1 + b1[None, :, None, None], approximate=False)
    h2 = jax.lax.conv_general_dilated(h1, w2, (1, 1), "VALID",
                                      dimension_numbers=dn)
    h2 = h2 + b2[None, :, None, None]
    mean = jnp.mean(h2, axis=(0, 2, 3), keepdims=True)
    var = jnp.var(h2, axis=(0, 2, 3), keepdims=True)
    hn = (h2 - mean) * jax.lax.rsqrt(var + eps)
    hn = hn * gamma[None, :, None, None] + beta[None, :, None, None]
    return jax.nn.gelu(hn, approximate=False)


if __name__ == "__main__":
    key = jax.random.PRNGKey(0)
    N, Cin, Cout, H, W = 2, 4, 8, 16, 16
    kx, k1, kb1, k2, kb2 = jax.random.split(key, 5)

    # Deterministic synthetic parameters (shapes match nn.Conv2d / BatchNorm2d)
    x = jax.random.normal(kx, (N, Cin, H, W), jnp.float32)
    w1 = jax.random.normal(k1, (Cout, Cin, 3, 3), jnp.float32) * 0.2
    b1 = jax.random.normal(kb1, (Cout,), jnp.float32) * 0.1
    w2 = jax.random.normal(k2, (Cout, Cout, 3, 3), jnp.float32) * 0.2
    b2 = jax.random.normal(kb2, (Cout,), jnp.float32) * 0.1
    gamma = jnp.ones((Cout,), jnp.float32)   # BatchNorm2d default weight
    beta = jnp.zeros((Cout,), jnp.float32)   # BatchNorm2d default bias

    out = conv_block_2d_3x3(x, w1, b1, w2, b2, gamma, beta)
    out = jax.block_until_ready(out)
    assert out.shape == (N, Cout, H - 4, W - 4), out.shape
    assert bool(jnp.all(jnp.isfinite(out)))

    # numerical check vs pure-JAX reference (loose tolerance: bf16 MXU operands)
    ref = _reference_forward(x, w1, b1, w2, b2, gamma, beta)
    assert bool(jnp.allclose(out, ref, atol=1e-1, rtol=1e-1)), (
        float(jnp.max(jnp.abs(out - ref))))
    print("KERNEL_OK")
</pallas_src>

<mosaic_0001>
module attributes {stable_mosaic.version = 11 : i64} {
  func.func @_roll_probe_kernel(%arg0: memref<8x128xi32, #tpu.memory_space<vmem>>, %arg1: memref<8x128xi32, #tpu.memory_space<vmem>>) attributes {dimension_semantics = [], scalar_prefetch = 0 : i64, scratch_operands = 0 : i64, tpu.core_type = #tpu.core_type<tc>} {
    %c0 = arith.constant 0 : index
    %c0_0 = arith.constant 0 : index
    %0 = vector.load %arg0[%c0, %c0_0] : memref<8x128xi32, #tpu.memory_space<vmem>>, vector<8x128xi32>
    %c1_i32 = arith.constant 1 : i32
    %1 = tpu.dynamic_rotate %0 by %c1_i32 dim 1 : vector<8x128xi32>, i32 -> vector<8x128xi32>
    %c0_1 = arith.constant 0 : index
    %c0_2 = arith.constant 0 : index
    %2 = vector.load %arg1[%c0_1, %c0_2] : memref<8x128xi32, #tpu.memory_space<vmem>>, vector<8x128xi32>
    tpu.vector_store %arg1[%c0_1, %c0_2], %1 {strides = array<i32>} : memref<8x128xi32, #tpu.memory_space<vmem>>, vector<8x128xi32>,
    return
  }
}

</mosaic_0001>

<bundles_post_ra>
// kernel: tpu_custom_call.1
= control target key start
LH: loop header
LB: loop body
LE: loop exit
PB: predicated region body
PF: predicated region fallthrough
CT: control target
= control target key end

     0   :  { %6 = vsyncpa [#allocation3], 0  ;;  %s118_s0 = inlined_call_operand.hbm [shape: s32[8,128], index: 0, kind: input, shape index: {}]   ;;  %s119_s1 = inlined_call_operand.hbm [shape: s32[8,128], index: 1, kind: output, shape index: {}]  }
   0x1   :  { %7 = vsyncpa [#allocation4], 0  ;;  %s13_s8 = sshll.u32 %s118_s0, 4  ;;  %s99_s9 = smov [#allocation2]   ;;  %s14_s8 = int_to_ptr.hbm [resolvable:$true] %s13_s8 }
   0x2   :  { %s15_s10 = sshll.u32 %s99_s9, 4  ;;  %s16_s10 = int_to_ptr.vmem [resolvable:$true] %s15_s10 }
   0x3   :  { %18 = dma.hbm_to_vmem [thread:$0]  %s14_s8, 128, %s16_s10, [#allocation3]  }
   0x4   :  { %95 = dma.done.wait [#allocation3], 128  }
   0x5   :  { %96 = vsyncadd [#allocation3], 4294967168  ;;  %v23_v0 = vld [vmem:[#allocation2] sm:$0xff]  ;;  %s100_s11 = smov 1   ;;  %s101_s12 = smov [#allocation5]  }
   0x6   :  { %24 = vrot.lane.b32.xlu0 %v23_v0, %s100_s11  ;;  %s32_s13 = sshll.u32 %s101_s12, 4  ;;  %s34_s16 = sshll.u32 %s119_s1, 4  ;;  %s33_s13 = int_to_ptr.vmem [resolvable:$true] %s32_s13  ;;  %s35_s16 = int_to_ptr.hbm [resolvable:$true] %s34_s16 }
  0x78   :  { %v25_v1 = vpop.permute.xlu0 %24 }
  0x79   :  { %26 = vst [vmem:[#allocation5] sm:$0xff] %v25_v1 }
  0x7a   :  { %37 = dma.vmem_to_hbm [thread:$0]  %s33_s13, 128, %s35_s16, [#allocation4]  }
  0x7b   :  { %97 = dma.done.wait [#allocation4], 128  }
  0x7c   :  { %98 = vsyncadd [#allocation4], 4294967168 }
  0x7d   :  { %42 = vsyncpa [#allocation3], 1 }
  0x7e   :  { %43 = vsyncpa [#allocation4], 1 }

</bundles_post_ra>
